<compile_context>
chip_gen: v6e
topology: v6e:2x2x1
jax: 0.10.0
libtpu: 0.0.40
codegen_flags: <defaults>
</compile_context>

<pallas_src>
import jax
import jax.numpy as jnp
from jax.experimental import pallas as pl
from jax.experimental.pallas import tpu as pltpu

BN_EPS = 1e-3


def _add_conv_bn_kernel(xa_ref, xb_ref, w_ref, gb_ref, o_ref):
    # Residual add on the VPU: [Cin, M].  Recomputed per Cout block (~22 vregs
    # of VALU work), far cheaper than materializing the sum through HBM.
    s = xa_ref[...] + xb_ref[...]

    # 1x1 conv == MXU matmul for this Cout block:
    #   [Cblk, Cin] @ [Cin, M] -> [Cblk, M], f32 accumulate (~42 vregs).
    acc = jnp.dot(w_ref[...], s, preferred_element_type=jnp.float32)

    # Training-mode BatchNorm2d: biased batch stats over all N*H*W positions
    # (= the lane/M axis here), per output channel.  Two-pass (centered)
    # variance for numerical robustness; the block accumulator is
    # register-resident so the second pass is nearly free.
    m = acc.shape[-1]                      # static real M (no padded columns)
    inv_m = 1.0 / float(m)
    mean = jnp.sum(acc, axis=-1, keepdims=True) * inv_m            # [Cblk, 1]
    centered = acc - mean
    var = jnp.sum(centered * centered, axis=-1, keepdims=True) * inv_m

    gamma = gb_ref[:, 0:1]                                          # [Cblk, 1]
    beta = gb_ref[:, 1:2]                                           # [Cblk, 1]
    scale = jax.lax.rsqrt(var + BN_EPS) * gamma

    # Single elementwise pass over this block's output slab.
    o_ref[...] = centered * scale + beta


def add_conv_bn(x133, x119, w, gamma, beta, *, cout_blocks=4):
    """x133, x119: NCHW [N, Cin, H, W]; w: [Cout, Cin] (1x1 conv weight, squeezed).

    Returns NCHW [N, Cout, H, W], matching the PyTorch module output.
    """
    N, Cin, H, W = x133.shape
    Cout = w.reshape(w.shape[0], -1).shape[0]
    M = N * H * W

    if N == 1:
        # NCHW with N == 1: [1, Cin, H, W] -> [Cin, H*W] is a free reshape.
        xa = x133.reshape(Cin, M)
        xb = x119.reshape(Cin, M)
    else:
        # TODO(synk): for N > 1 this transpose is a real layout shuffle; a
        # batched kernel (batch grid axis + cross-batch BN stats) would be
        # needed to avoid it.
        xa = jnp.transpose(x133, (1, 0, 2, 3)).reshape(Cin, M)
        xb = jnp.transpose(x119, (1, 0, 2, 3)).reshape(Cin, M)

    # Weight kept in f32 (see header note on bf16 accuracy vs. the 2e-3 check).
    w2 = w.reshape(Cout, Cin).astype(jnp.float32)
    # Pack gamma/beta into one [Cout, 2] array: single DMA / VMEM buffer.
    gb = jnp.stack(
        [gamma.reshape(Cout).astype(jnp.float32),
         beta.reshape(Cout).astype(jnp.float32)],
        axis=-1,
    )

    assert Cout % cout_blocks == 0
    cblk = Cout // cout_blocks
    assert cblk % 8 == 0, "Cout block must be sublane-aligned"

    out_flat = pl.pallas_call(
        _add_conv_bn_kernel,
        out_shape=jax.ShapeDtypeStruct((Cout, M), jnp.float32),
        grid_spec=pl.GridSpec(
            grid=(cout_blocks,),
            in_specs=[
                pl.BlockSpec((Cin, M), lambda i: (0, 0)),      # xa (fetched once)
                pl.BlockSpec((Cin, M), lambda i: (0, 0)),      # xb (fetched once)
                pl.BlockSpec((cblk, Cin), lambda i: (i, 0)),   # weight block
                pl.BlockSpec((cblk, 2), lambda i: (i, 0)),     # gamma/beta block
            ],
            out_specs=pl.BlockSpec((cblk, M), lambda i: (i, 0)),
        ),
        compiler_params=pltpu.CompilerParams(
            # Cout blocks are fully independent (per-channel BN stats):
            # shard them across both v7x TensorCores; on single-TC parts the
            # grid still buys DMA/compute overlap via BlockSpec pipelining.
            dimension_semantics=("parallel",),
        ),
    )(xa, xb, w2, gb)

    if N == 1:
        return out_flat.reshape(1, Cout, H, W)       # free reshape back to NCHW
    return jnp.transpose(out_flat.reshape(Cout, N, H, W), (1, 0, 2, 3))


def _reference(x133, x119, w, gamma, beta):
    """Pure-JAX reference of the PyTorch forward (training-mode BN)."""
    s = x133 + x119                                               # [N, Cin, H, W]
    conv = jnp.einsum("nchw,oc->nohw", s, w)                      # 1x1 conv, no bias
    mean = jnp.mean(conv, axis=(0, 2, 3), keepdims=True)
    var = jnp.mean((conv - mean) ** 2, axis=(0, 2, 3), keepdims=True)
    g = gamma.reshape(1, -1, 1, 1)
    b = beta.reshape(1, -1, 1, 1)
    return (conv - mean) / jnp.sqrt(var + BN_EPS) * g + b


if __name__ == "__main__":
    # Shapes implied by the module: N=1, Cin=112, H=W=14, Cout=672.
    N, Cin, H, W, Cout = 1, 112, 14, 14, 672

    key = jax.random.PRNGKey(0)
    k_x133, k_x119, k_w, k_g, k_b = jax.random.split(key, 5)

    x133 = jax.random.normal(k_x133, (N, Cin, H, W), dtype=jnp.float32)
    x119 = jax.random.normal(k_x119, (N, Cin, H, W), dtype=jnp.float32)

    # Deterministic synthetic parameters (small random affine so it is exercised).
    w = jax.random.normal(k_w, (Cout, Cin), dtype=jnp.float32) * 0.05
    gamma = 1.0 + 0.1 * jax.random.normal(k_g, (Cout,), dtype=jnp.float32)
    beta = 0.1 * jax.random.normal(k_b, (Cout,), dtype=jnp.float32)

    out = add_conv_bn(x133, x119, w, gamma, beta)
    out = jax.block_until_ready(out)

    ref = _reference(x133, x119, w, gamma, beta)
    assert out.shape == (N, Cout, H, W)
    assert jnp.allclose(out, ref, atol=2e-3, rtol=2e-3), float(
        jnp.max(jnp.abs(out - ref))
    )

    print("KERNEL_OK")
</pallas_src>

<mosaic_0001>
module attributes {stable_mosaic.version = 11 : i64} {
  func.func @_add_conv_bn_kernel(%arg0: i32, %arg1: memref<112x196xf32, #tpu.memory_space<vmem>>, %arg2: memref<112x196xf32, #tpu.memory_space<vmem>>, %arg3: memref<168x112xf32, #tpu.memory_space<vmem>>, %arg4: memref<168x2xf32, #tpu.memory_space<vmem>>, %arg5: memref<168x196xf32, #tpu.memory_space<vmem>>) attributes {dimension_semantics = [#tpu.dimension_semantics<parallel>], iteration_bounds = array<i64: 4>, scalar_prefetch = 0 : i64, scratch_operands = 0 : i64, tpu.core_type = #tpu.core_type<tc>, window_params = [{pipeline_mode = #tpu.pipeline_mode<synchronous>, transform_indices = @transform_0, window_bounds = array<i64: 112, 196>}, {pipeline_mode = #tpu.pipeline_mode<synchronous>, transform_indices = @transform_1, window_bounds = array<i64: 112, 196>}, {transform_indices = @transform_2, window_bounds = array<i64: 168, 112>}, {transform_indices = @transform_3, window_bounds = array<i64: 168, 2>}, {transform_indices = @transform_4, window_bounds = array<i64: 168, 196>}]} {
    %c0 = arith.constant 0 : index
    %c0_0 = arith.constant 0 : index
    %0 = vector.load %arg1[%c0, %c0_0] : memref<112x196xf32, #tpu.memory_space<vmem>>, vector<112x196xf32>
    %c0_1 = arith.constant 0 : index
    %c0_2 = arith.constant 0 : index
    %1 = vector.load %arg2[%c0_1, %c0_2] : memref<112x196xf32, #tpu.memory_space<vmem>>, vector<112x196xf32>
    %2 = arith.addf %0, %1 : vector<112x196xf32>
    %c0_3 = arith.constant 0 : index
    %c0_4 = arith.constant 0 : index
    %3 = vector.load %arg3[%c0_3, %c0_4] : memref<168x112xf32, #tpu.memory_space<vmem>>, vector<168x112xf32>
    %cst = arith.constant dense<0.000000e+00> : vector<168x196xf32>
    %4 = tpu.matmul %3, %2, %cst {dimension_numbers = #tpu.dot_dimension_numbers<[1], [0], [0], [1], [0, 0, 1, 1], [], []>} : vector<168x112xf32>, vector<112x196xf32>, vector<168x196xf32> -> vector<168x196xf32>
    %cst_5 = arith.constant dense<0.000000e+00> : vector<168xf32>
    %5 = vector.multi_reduction <add>, %4, %cst_5 [1] : vector<168x196xf32> to vector<168xf32>
    %6 = vector.shape_cast %5 : vector<168xf32> to vector<168x1xf32>
    %cst_6 = arith.constant 0.00510204071 : f32
    %7 = vector.broadcast %cst_6 : f32 to vector<168x1xf32>
    %8 = arith.mulf %6, %7 : vector<168x1xf32>
    %9 = vector.broadcast %8 : vector<168x1xf32> to vector<168x196xf32>
    %10 = arith.subf %4, %9 : vector<168x196xf32>
    %11 = arith.mulf %10, %10 : vector<168x196xf32>
    %cst_7 = arith.constant dense<0.000000e+00> : vector<168xf32>
    %12 = vector.multi_reduction <add>, %11, %cst_7 [1] : vector<168x196xf32> to vector<168xf32>
    %13 = vector.shape_cast %12 : vector<168xf32> to vector<168x1xf32>
    %cst_8 = arith.constant 0.00510204071 : f32
    %14 = vector.broadcast %cst_8 : f32 to vector<168x1xf32>
    %15 = arith.mulf %13, %14 : vector<168x1xf32>
    %c0_9 = arith.constant 0 : index
    %c0_10 = arith.constant 0 : index
    %16 = vector.load %arg4[%c0_9, %c0_10] : memref<168x2xf32, #tpu.memory_space<vmem>>, vector<168x1xf32>
    %c0_11 = arith.constant 0 : index
    %c1 = arith.constant 1 : index
    %17 = vector.load %arg4[%c0_11, %c1] : memref<168x2xf32, #tpu.memory_space<vmem>>, vector<168x1xf32>
    %cst_12 = arith.constant 1.000000e-03 : f32
    %18 = vector.broadcast %cst_12 : f32 to vector<168x1xf32>
    %19 = arith.addf %15, %18 : vector<168x1xf32>
    %20 = math.rsqrt %19 : vector<168x1xf32>
    %21 = arith.mulf %20, %16 : vector<168x1xf32>
    %22 = vector.broadcast %21 : vector<168x1xf32> to vector<168x196xf32>
    %23 = arith.mulf %10, %22 : vector<168x196xf32>
    %24 = vector.broadcast %17 : vector<168x1xf32> to vector<168x196xf32>
    %25 = arith.addf %23, %24 : vector<168x196xf32>
    %c0_13 = arith.constant 0 : index
    %c0_14 = arith.constant 0 : index
    %26 = vector.load %arg5[%c0_13, %c0_14] : memref<168x196xf32, #tpu.memory_space<vmem>>, vector<168x196xf32>
    tpu.vector_store %arg5[%c0_13, %c0_14], %25 {strides = array<i32>} : memref<168x196xf32, #tpu.memory_space<vmem>>, vector<168x196xf32>,
    return
  }
  func.func @transform_0(%arg0: i32) -> (i32, i32) {
    %c0_i32 = arith.constant 0 : i32
    %c0_i32_0 = arith.constant 0 : i32
    %c0_i32_1 = arith.constant 0 : i32
    return %c0_i32, %c0_i32_0 : i32, i32
  }
  func.func @transform_1(%arg0: i32) -> (i32, i32) {
    %c0_i32 = arith.constant 0 : i32
    %c0_i32_0 = arith.constant 0 : i32
    %c0_i32_1 = arith.constant 0 : i32
    return %c0_i32, %c0_i32_0 : i32, i32
  }
  func.func @transform_2(%arg0: i32) -> (i32, i32) {
    %c0_i32 = arith.constant 0 : i32
    %c0_i32_0 = arith.constant 0 : i32
    return %arg0, %c0_i32 : i32, i32
  }
  func.func @transform_3(%arg0: i32) -> (i32, i32) {
    %c0_i32 = arith.constant 0 : i32
    %c0_i32_0 = arith.constant 0 : i32
    return %arg0, %c0_i32 : i32, i32
  }
  func.func @transform_4(%arg0: i32) -> (i32, i32) {
    %c0_i32 = arith.constant 0 : i32
    %c0_i32_0 = arith.constant 0 : i32
    return %arg0, %c0_i32 : i32, i32
  }
}

</mosaic_0001>

<bundles_post_ra>
// kernel: tpu_custom_call.1
= control target key start
LH: loop header
LB: loop body
LE: loop exit
PB: predicated region body
PF: predicated region fallthrough
CT: control target
= control target key end

     0   :  { %s1526_s15 = smov 0   ;;  %s2443_s0 = inlined_call_operand.vmem [shape: f32[112,196], index: 0, kind: input, shape index: {}]   ;;  %s2444_s1 = inlined_call_operand.vmem [shape: f32[112,196], index: 1, kind: input, shape index: {}]   ;;  %s2445_s2 = inlined_call_operand.vmem [shape: f32[672,112], index: 2, kind: input, shape index: {}]   ;;  %s2446_s3 = inlined_call_operand.vmem [shape: f32[672,2], index: 3, kind: input, shape index: {}]   ;;  %s2447_s4 = inlined_call_operand.vmem [shape: f32[672,196], index: 4, kind: output, shape index: {}]  }
   0x1 LB: > { %s1370_s16 = sadd.s32 4294967295, %s1496_s15   ;;  %p1374_p0 = scmp.ge.s32.totalorder %s1496_s15, 1  ;;  %s1496_s15 = sphi %s1526_s15, %s14_s15  }
   0x2   : > { %p174_p1 = scmp.lt.s32.totalorder %s1496_s15, 5 }
   0x4   : > { %p175_p2 = pnand %p1374_p0, %p174_p1 }
   0x6   : > { %178 = sbr.rel (%p175_p2) target bundleno = 796 (0x31c), region = 36 }
   0xb   : > { %v252_v0 = vld [vmem:[%s2443_s0 + $0xd8] sm:$0xff]  ;;  %v251_v2 = vld [vmem:[%s2443_s0 + $0xd0] sm:$0xff]  ;;  %v250_v5 = vld [vmem:[%s2443_s0 + $0xc8] sm:$0xff]  ;;  %v1498_v7 = vmov 0.0   ;;  %v2448_v13 = vmov 1   ;;  %s1630_s29 = smul.u32 21, %s1370_s16 }
   0xc   : > { %v280_v1 = vld [vmem:[%s2444_s1 + $0xd8] sm:$0xff]  ;;  %v279_v4 = vld [vmem:[%s2444_s1 + $0xd0] sm:$0xff]  ;;  %v278_v6 = vld [vmem:[%s2444_s1 + $0xc8] sm:$0xff]  ;;  %458 = vmatprep.mubr.f32.mxu0 %v1498_v7  ;;  %524 = vmatprep.mubr.f32.mxu1 %v1498_v7  ;;  %vm330_vm0 = vcmask 916480   ;;  %vm585_vm1 = vcmask 556032  }
   0xd   : > { %v308_v3 = vadd.f32 %v280_v1, %v252_v0  ;;  %v307_v8 = vadd.f32 %v279_v4, %v251_v2  ;;  %v306_v9 = vadd.f32 %v278_v6, %v250_v5  ;;  %v249_v10 = vld [vmem:[%s2443_s0 + $0xc0] sm:$0xff]  ;;  %v248_v12 = vld [vmem:[%s2443_s0 + $0xb8] sm:$0xff]  ;;  %1443 = vset.pattern.permute.xlu1 %v2448_v13  ;;  %1442 = vset.pattern.permute.xlu0 %v2448_v13  ;;  %v247_v16 = vld [vmem:[%s2443_s0 + $0xb0] sm:$0xff]  ;;  %p207_p3 = scmp.lt.s32.totalorder %s1630_s29, 83 }
   0xe   : > { %v277_v11 = vld [vmem:[%s2444_s1 + $0xc0] sm:$0xff]  ;;  %v276_v15 = vld [vmem:[%s2444_s1 + $0xb8] sm:$0xff]  ;;  %v275_v17 = vld [vmem:[%s2444_s1 + $0xb0] sm:$0xff] }
   0xf   : > { %398 = vmatprep.subr.mxu0 %v308_v3  ;;  %1403 = vmatprep.subr.mxu1 %v308_v3  ;;  %v305_v14 = vadd.f32 %v277_v11, %v249_v10  ;;  %v304_v18 = vadd.f32 %v276_v15, %v248_v12  ;;  %v303_v19 = vadd.f32 %v275_v17, %v247_v16  ;;  %v246_v20 = vld [vmem:[%s2443_s0 + $0xa8] sm:$0xff]  ;;  %v245_v22 = vld [vmem:[%s2443_s0 + $0xa0] sm:$0xff]  ;;  %v244_v25 = vld [vmem:[%s2443_s0 + $0x98] sm:$0xff]  ;;  %s2512_s29 = smov (!%p207_p3, %s1630_s29), 83 }
  0x10   : > { %399 = vmatpush1.msra.mxu0 %v307_v8  ;;  %1417 = vmatpush1.msra.mxu1 %v307_v8  ;;  %v274_v21 = vld [vmem:[%s2444_s1 + $0xa8] sm:$0xff]  ;;  %v273_v24 = vld [vmem:[%s2444_s1 + $0xa0] sm:$0xff]  ;;  %v272_v26 = vld [vmem:[%s2444_s1 + $0x98] sm:$0xff]  ;;  %s1375_s30 = sshll.u32 %s2512_s29, 3  ;;  %s1402_s14 = sshll.u32 %s2512_s29, 4 }
  0x11   : > { %400 = vmatprep.subr.mxu0 %v306_v9  ;;  %1404 = vmatprep.subr.mxu1 %v306_v9  ;;  %v302_v23 = vadd.f32 %v274_v21, %v246_v20  ;;  %v301_v27 = vadd.f32 %v273_v24, %v245_v22  ;;  %v243_v28 = vld [vmem:[%s2443_s0 + $0x90] sm:$0xff]  ;;  %v242_v30 = vld [vmem:[%s2443_s0 + $0x88] sm:$0xff]  ;;  %v300_v31 = vadd.f32 %v272_v26, %v244_v25  ;;  %v241_v33 = vld [vmem:[%s2443_s0 + $0x80] sm:$0xff]  ;;  %s1720_s10 = scalar_lea.vmem %s2445_s2, %s1375_s30  ;;  %s1725_s13 = scalar_lea.vmem %s2446_s3, %s1375_s30 }
  0x12   : > { %401 = vmatpush1.msra.mxu0 %v305_v14  ;;  %1418 = vmatpush1.msra.mxu1 %v305_v14  ;;  %v271_v29 = vld [vmem:[%s2444_s1 + $0x90] sm:$0xff]  ;;  %v270_v32 = vld [vmem:[%s2444_s1 + $0x88] sm:$0xff]  ;;  %v269_v34 = vld [vmem:[%s2444_s1 + $0x80] sm:$0xff]  ;;  %s2303_s19 = scalar_lea.vmem %s2447_s4, %s1402_s14 }
  0x13   : > { %402 = vmatprep.subr.mxu0 %v304_v18  ;;  %1405 = vmatprep.subr.mxu1 %v304_v18  ;;  %v299_v35 = vadd.f32 %v271_v29, %v243_v28  ;;  %v240_v36 = vld [vmem:[%s2443_s0 + $0x78] sm:$0xff]  ;;  %v298_v38 = vadd.f32 %v270_v32, %v242_v30  ;;  %v239_v39 = vld [vmem:[%s2443_s0 + $0x70] sm:$0xff]  ;;  %v297_v41 = vadd.f32 %v269_v34, %v241_v33  ;;  %v238_v42 = vld [vmem:[%s2443_s0 + $0x68] sm:$0xff] }
  0x14   : > { %403 = vmatpush1.msra.mxu0 %v303_v19  ;;  %1419 = vmatpush1.msra.mxu1 %v303_v19  ;;  %v268_v37 = vld [vmem:[%s2444_s1 + $0x78] sm:$0xff]  ;;  %v267_v40 = vld [vmem:[%s2444_s1 + $0x70] sm:$0xff]  ;;  %v266_v43 = vld [vmem:[%s2444_s1 + $0x68] sm:$0xff] }
  0x15   : > { %404 = vmatprep.subr.mxu0 %v302_v23  ;;  %1406 = vmatprep.subr.mxu1 %v302_v23  ;;  %v296_v44 = vadd.f32 %v268_v37, %v240_v36  ;;  %v237_v45 = vld [vmem:[%s2443_s0 + $0x60] sm:$0xff]  ;;  %v295_v47 = vadd.f32 %v267_v40, %v239_v39  ;;  %v236_v48 = vld [vmem:[%s2443_s0 + $0x58] sm:$0xff]  ;;  %v294_v50 = vadd.f32 %v266_v43, %v238_v42  ;;  %v235_v51 = vld [vmem:[%s2443_s0 + $0x50] sm:$0xff] }
  0x16   : > { %405 = vmatpush1.msra.mxu0 %v301_v27  ;;  %1420 = vmatpush1.msra.mxu1 %v301_v27  ;;  %v265_v46 = vld [vmem:[%s2444_s1 + $0x60] sm:$0xff]  ;;  %v264_v49 = vld [vmem:[%s2444_s1 + $0x58] sm:$0xff]  ;;  %v263_v52 = vld [vmem:[%s2444_s1 + $0x50] sm:$0xff] }
  0x17   : > { %406 = vmatprep.subr.mxu0 %v300_v31  ;;  %1407 = vmatprep.subr.mxu1 %v300_v31  ;;  %v293_v53 = vadd.f32 %v265_v46, %v237_v45  ;;  %v234_v54 = vld [vmem:[%s2443_s0 + $0x48] sm:$0xff]  ;;  %v292_v56 = vadd.f32 %v264_v49, %v236_v48  ;;  %v233_v57 = vld [vmem:[%s2443_s0 + $0x40] sm:$0xff]  ;;  %v291_v59 = vadd.f32 %v263_v52, %v235_v51  ;;  %v232_v60 = vld [vmem:[%s2443_s0 + $0x38] sm:$0xff] }
  0x18   : > { %407 = vmatpush1.msra.mxu0 %v299_v35  ;;  %1421 = vmatpush1.msra.mxu1 %v299_v35  ;;  %v262_v55 = vld [vmem:[%s2444_s1 + $0x48] sm:$0xff]  ;;  %v261_v58 = vld [vmem:[%s2444_s1 + $0x40] sm:$0xff]  ;;  %v260_v61 = vld [vmem:[%s2444_s1 + $0x38] sm:$0xff] }
  0x19   : > { %408 = vmatprep.subr.mxu0 %v298_v38  ;;  %1408 = vmatprep.subr.mxu1 %v298_v38  ;;  %v290_v62 = vadd.f32 %v262_v55, %v234_v54  ;;  %v231_v63 = vld [vmem:[%s2443_s0 + $0x30] sm:$0xff]  ;;  %v289_v1 = vadd.f32 %v261_v58, %v233_v57  ;;  %v230_v2 = vld [vmem:[%s2443_s0 + $0x28] sm:$0xff]  ;;  %v288_v4 = vadd.f32 %v260_v61, %v232_v60  ;;  %v229_v5 = vld [vmem:[%s2443_s0 + $0x20] sm:$0xff] }
  0x1a   : > { %409 = vmatpush1.msra.mxu0 %v297_v41  ;;  %1422 = vmatpush1.msra.mxu1 %v297_v41  ;;  %v259_v0 = vld [vmem:[%s2444_s1 + $0x30] sm:$0xff]  ;;  %v258_v3 = vld [vmem:[%s2444_s1 + $0x28] sm:$0xff]  ;;  %v257_v6 = vld [vmem:[%s2444_s1 + $0x20] sm:$0xff] }
  0x1b   : > { %410 = vmatprep.subr.mxu0 %v296_v44  ;;  %1409 = vmatprep.subr.mxu1 %v296_v44  ;;  %v287_v8 = vadd.f32 %v259_v0, %v231_v63  ;;  %v228_v9 = vld [vmem:[%s2443_s0 + $0x18] sm:$0xff]  ;;  %v286_v11 = vadd.f32 %v258_v3, %v230_v2  ;;  %v227_v12 = vld [vmem:[%s2443_s0 + $0x10] sm:$0xff]  ;;  %v285_v15 = vadd.f32 %v257_v6, %v229_v5  ;;  %v226_v16 = vld [vmem:[%s2443_s0 + $0x8] sm:$0xff] }
  0x1c   : > { %411 = vmatpush1.msra.mxu0 %v295_v47  ;;  %1423 = vmatpush1.msra.mxu1 %v295_v47  ;;  %v256_v10 = vld [vmem:[%s2444_s1 + $0x18] sm:$0xff]  ;;  %v255_v14 = vld [vmem:[%s2444_s1 + $0x10] sm:$0xff]  ;;  %v254_v17 = vld [vmem:[%s2444_s1 + $0x8] sm:$0xff] }
  0x1d   : > { %412 = vmatprep.subr.mxu0 %v294_v50  ;;  %1410 = vmatprep.subr.mxu1 %v294_v50  ;;  %v284_v18 = vadd.f32 %v256_v10, %v228_v9  ;;  %v225_v19 = vld [vmem:[%s2443_s0] sm:$0xff]  ;;  %v283_v21 = vadd.f32 %v255_v14, %v227_v12  ;;  %v282_v22 = vadd.f32 %v254_v17, %v226_v16  ;;  %v320_v25 = vld [vmem:[%s1720_s10 + $0x58] sm:$0xff]  ;;  %v1730_v26 = vld [vmem:[%s1725_s13 + $0x8] sm:$0xff] }
  0x1e   : > { %413 = vmatpush1.msra.mxu0 %v293_v53  ;;  %1424 = vmatpush1.msra.mxu1 %v293_v53  ;;  %v253_v20 = vld [vmem:[%s2444_s1] sm:$0xff]  ;;  %v310_v28 = vld [vmem:[%s1720_s10 + $0x8] sm:$0xff]  ;;  %v1744_v30 = vld [vmem:[%s1725_s13 + $0x10] sm:$0xff] }
  0x1f   : > { %414 = vmatprep.subr.mxu0 %v292_v56  ;;  %1411 = vmatprep.subr.mxu1 %v292_v56  ;;  %v281_v23 = vadd.f32 %v253_v20, %v225_v19  ;;  %v309_v24 = vld [vmem:[%s1720_s10] sm:$0xff]  ;;  %v311_v31 = vld [vmem:[%s1720_s10 + $0x10] sm:$0xff]  ;;  %v322_v32 = vld [vmem:[%s1720_s10 + $0x68] sm:$0xff] }
  0x20   : > { %415 = vmatpush1.msra.mxu0 %v291_v59  ;;  %1425 = vmatpush1.msra.mxu1 %v291_v59  ;;  %v1733_v27 = vld [vmem:[%s1725_s13] sm:$0xff]  ;;  %v312_v33 = vld [vmem:[%s1720_s10 + $0x18] sm:$0xff]  ;;  %v323_v34 = vld [vmem:[%s1720_s10 + $0x70] sm:$0xff] }
  0x21   : > { %416 = vmatprep.subr.mxu0 %v290_v62  ;;  %1412 = vmatprep.subr.mxu1 %v290_v62  ;;  %v321_v29 = vld [vmem:[%s1720_s10 + $0x60] sm:$0xff]  ;;  %v324_v36 = vld [vmem:[%s1720_s10 + $0x78] sm:$0xff]  ;;  %v314_v37 = vld [vmem:[%s1720_s10 + $0x28] sm:$0xff] }
  0x22   : > { %417 = vmatpush1.msra.mxu0 %v289_v1  ;;  %1426 = vmatpush1.msra.mxu1 %v289_v1  ;;  %v313_v35 = vld [vmem:[%s1720_s10 + $0x20] sm:$0xff]  ;;  %v315_v39 = vld [vmem:[%s1720_s10 + $0x30] sm:$0xff]  ;;  %v326_v40 = vld [vmem:[%s1720_s10 + $0x88] sm:$0xff] }
  0x23   : > { %418 = vmatprep.subr.mxu0 %v288_v4  ;;  %1413 = vmatprep.subr.mxu1 %v288_v4  ;;  %v325_v38 = vld [vmem:[%s1720_s10 + $0x80] sm:$0xff]  ;;  %v316_v41 = vld [vmem:[%s1720_s10 + $0x38] sm:$0xff]  ;;  %v327_v42 = vld [vmem:[%s1720_s10 + $0x90] sm:$0xff] }
  0x24   : > { %419 = vmatpush1.msra.mxu0 %v287_v8  ;;  %1427 = vmatpush1.msra.mxu1 %v287_v8  ;;  %v317_v43 = vld [vmem:[%s1720_s10 + $0x40] sm:$0xff]  ;;  %v328_v44 = vld [vmem:[%s1720_s10 + $0x98] sm:$0xff]  ;;  %v318_v45 = vld [vmem:[%s1720_s10 + $0x48] sm:$0xff] }
  0x25   : > { %420 = vmatprep.subr.mxu0 %v286_v11  ;;  %1414 = vmatprep.subr.mxu1 %v286_v11  ;;  %v329_v46 = vld [vmem:[%s1720_s10 + $0xa0] sm:$0xff]  ;;  %v319_v47 = vld [vmem:[%s1720_s10 + $0x50] sm:$0xff] }
  0x26   : > { %421 = vmatpush1.msra.mxu0 %v285_v15  ;;  %1428 = vmatpush1.msra.mxu1 %v285_v15 }
  0x27   : > { %422 = vmatprep.subr.mxu0 %v284_v18  ;;  %1415 = vmatprep.subr.mxu1 %v284_v18 }
  0x28   : > { %423 = vmatpush1.msra.mxu0 %v283_v21  ;;  %1429 = vmatpush1.msra.mxu1 %v283_v21 }
  0x29   : > { %424 = vmatprep.subr.mxu0 %v282_v22  ;;  %1416 = vmatprep.subr.mxu1 %v282_v22 }
  0x2a   : > { %425 = vmatpush1.msra.mxu0 %v281_v23  ;;  %1430 = vmatpush1.msra.mxu1 %v281_v23 }
  0x2b   : > { %1379 = vmatmul.mubr.msk.f32.vlgmr.msra.gmra.mxu0 %vm330_vm0, %v309_v24  ;;  %1390 = vmatmul.mubr.msk.f32.vlgmr.msra.gmra.mxu1 %vm330_vm0, %v320_v25 }
  0x2c   : > { %464 = vmatprep.mubr.f32.mxu0 %v1498_v7  ;;  %530 = vmatprep.mubr.f32.mxu1 %v1498_v7 }
  0x2d   : > { %1118 = vperm.xlu1 %1443, %v1730_v26   ;;  %1113 = vperm.xlu0 %1442, %v1733_v27  }
  0x2f   : > { %1380 = vmatmul.mubr.msk.f32.gmra.mxu0 %vm330_vm0, %v310_v28  ;;  %1391 = vmatmul.mubr.msk.f32.gmra.mxu1 %vm330_vm0, %v321_v29 }
  0x30   : > { %470 = vmatprep.mubr.f32.mxu0 %v1498_v7  ;;  %536 = vmatprep.mubr.f32.mxu1 %v1498_v7 }
  0x31   : > { %1123 = vperm.xlu1 %1443, %v1744_v30  }
  0x33   : > { %1381 = vmatmul.mubr.msk.f32.gmra.mxu0 %vm330_vm0, %v311_v31  ;;  %1392 = vmatmul.mubr.msk.f32.gmra.mxu1 %vm330_vm0, %v322_v32 }
  0x34   : > { %476 = vmatprep.mubr.f32.mxu0 %v1498_v7  ;;  %542 = vmatprep.mubr.f32.mxu1 %v1498_v7 }
  0x37   : > { %1382 = vmatmul.mubr.msk.f32.gmra.mxu0 %vm330_vm0, %v312_v33  ;;  %1393 = vmatmul.mubr.msk.f32.gmra.mxu1 %vm330_vm0, %v323_v34 }
  0x38   : > { %482 = vmatprep.mubr.f32.mxu0 %v1498_v7  ;;  %548 = vmatprep.mubr.f32.mxu1 %v1498_v7 }
  0x3b   : > { %1383 = vmatmul.mubr.msk.f32.gmra.mxu0 %vm330_vm0, %v313_v35  ;;  %1394 = vmatmul.mubr.msk.f32.gmra.mxu1 %vm330_vm0, %v324_v36 }
  0x3c   : > { %488 = vmatprep.mubr.f32.mxu0 %v1498_v7  ;;  %554 = vmatprep.mubr.f32.mxu1 %v1498_v7 }
  0x3f   : > { %1384 = vmatmul.mubr.msk.f32.gmra.mxu0 %vm330_vm0, %v314_v37  ;;  %1395 = vmatmul.mubr.msk.f32.gmra.mxu1 %vm330_vm0, %v325_v38 }
  0x40   : > { %494 = vmatprep.mubr.f32.mxu0 %v1498_v7  ;;  %560 = vmatprep.mubr.f32.mxu1 %v1498_v7 }
  0x43   : > { %1385 = vmatmul.mubr.msk.f32.gmra.mxu0 %vm330_vm0, %v315_v39  ;;  %1396 = vmatmul.mubr.msk.f32.gmra.mxu1 %vm330_vm0, %v326_v40 }
  0x44   : > { %500 = vmatprep.mubr.f32.mxu0 %v1498_v7  ;;  %566 = vmatprep.mubr.f32.mxu1 %v1498_v7 }
  0x47   : > { %1386 = vmatmul.mubr.msk.f32.gmra.mxu0 %vm330_vm0, %v316_v41  ;;  %1397 = vmatmul.mubr.msk.f32.gmra.mxu1 %vm330_vm0, %v327_v42 }
  0x48   : > { %506 = vmatprep.mubr.f32.mxu0 %v1498_v7  ;;  %572 = vmatprep.mubr.f32.mxu1 %v1498_v7 }
  0x4b   : > { %1387 = vmatmul.mubr.msk.f32.gmra.mxu0 %vm330_vm0, %v317_v43  ;;  %1398 = vmatmul.mubr.msk.f32.gmra.mxu1 %vm330_vm0, %v328_v44 }
  0x4c   : > { %512 = vmatprep.mubr.f32.mxu0 %v1498_v7  ;;  %578 = vmatprep.mubr.f32.mxu1 %v1498_v7 }
  0x4f   : > { %1388 = vmatmul.mubr.msk.f32.gmra.mxu0 %vm330_vm0, %v318_v45  ;;  %1399 = vmatmul.mubr.msk.f32.gmra.mxu1 %vm330_vm0, %v329_v46 }
  0x50   : > { %518 = vmatprep.mubr.f32.mxu0 %v1498_v7 }
  0x53   : > { %1389 = vmatmul.mubr.msk.f32.gmra.mxu0 %vm330_vm0, %v319_v47 }
  0xeb   : > { %v1800_v48 = vpop.f32.mrf.mxu0  ;;  %v1802_v49 = vpop.f32.mrf.mxu1 }
  0xed   : > { %v1804_v50 = vpop.f32.mrf.mxu0  ;;  %v1806_v51 = vpop.f32.mrf.mxu1 }
  0xee   : > { %v586_v52 = vsel %vm585_vm1, %v1804_v50, 0.0  ;;  %v630_v53 = vsel %vm585_vm1, %v1806_v51, 0.0 }
  0xef   : > { %v1812_v54 = vpop.f32.mrf.mxu0  ;;  %v1814_v7 = vpop.f32.mrf.mxu1  ;;  %v631_v55 = vadd.f32 %v630_v53, %v1802_v49  ;;  %v587_v56 = vadd.f32 %v586_v52, %v1800_v48 }
  0xf1   : > { %632 = vadd.xlane.f32.xlu1 %v631_v55  ;;  %v1818_v57 = vpop.f32.mrf.mxu1  ;;  %588 = vadd.xlane.f32.xlu0 %v587_v56  ;;  %v1820_v58 = vpop.f32.mrf.mxu0 }
  0xf2   : > { %v590_v59 = vsel %vm585_vm1, %v1820_v58, 0.0  ;;  %v634_v63 = vsel %vm585_vm1, %v1818_v57, 0.0 }
  0xf3   : > { %v1824_v60 = vpop.f32.mrf.mxu0  ;;  %v1826_v61 = vpop.f32.mrf.mxu1  ;;  %v591_v62 = vadd.f32 %v590_v59, %v1812_v54  ;;  %v635_v5 = vadd.f32 %v634_v63, %v1814_v7 }
  0xf5   : > { %v1831_v0 = vpop.f32.mrf.mxu1  ;;  %592 = vadd.xlane.f32.xlu0 %v591_v62  ;;  %v1833_v1 = vpop.f32.mrf.mxu0 }
  0xf6   : > { %v594_v2 = vsel %vm585_vm1, %v1833_v1, 0.0  ;;  %v638_v8 = vsel %vm585_vm1, %v1831_v0, 0.0 }
  0xf7   : > { %v1837_v3 = vpop.f32.mrf.mxu0  ;;  %v1839_v4 = vpop.f32.mrf.mxu1  ;;  %v595_v6 = vadd.f32 %v594_v2, %v1824_v60  ;;  %v639_v16 = vadd.f32 %v638_v8, %v1826_v61 }
  0xf9   : > { %v1845_v9 = vpop.f32.mrf.mxu1  ;;  %636 = vadd.xlane.f32.xlu0 %v635_v5  ;;  %596 = vadd.xlane.f32.xlu1 %v595_v6  ;;  %v1847_v10 = vpop.f32.mrf.mxu0 }
  0xfa   : > { %v642_v11 = vsel %vm585_vm1, %v1845_v9, 0.0  ;;  %v598_v17 = vsel %vm585_vm1, %v1847_v10, 0.0 }
  0xfb   : > { %v1851_v12 = vpop.f32.mrf.mxu0  ;;  %v1853_v14 = vpop.f32.mrf.mxu1  ;;  %v643_v15 = vadd.f32 %v642_v11, %v1839_v4  ;;  %v599_v23 = vadd.f32 %v598_v17, %v1837_v3 }
  0xfd   : > { %v1859_v18 = vpop.f32.mrf.mxu1  ;;  %644 = vadd.xlane.f32.xlu0 %v643_v15  ;;  %640 = vadd.xlane.f32.xlu1 %v639_v16  ;;  %v1861_v19 = vpop.f32.mrf.mxu0 }
  0xfe   : > { %v602_v20 = vsel %vm585_vm1, %v1861_v19, 0.0  ;;  %v646_v25 = vsel %vm585_vm1, %v1859_v18, 0.0 }
  0xff   : > { %v1865_v21 = vpop.f32.mrf.mxu0  ;;  %v1867_v22 = vpop.f32.mrf.mxu1  ;;  %v603_v24 = vadd.f32 %v602_v20, %v1851_v12  ;;  %v647_v34 = vadd.f32 %v646_v25, %v1853_v14 }
 0x101   : > { %v1873_v28 = vpop.f32.mrf.mxu1  ;;  %600 = vadd.xlane.f32.xlu1 %v599_v23  ;;  %604 = vadd.xlane.f32.xlu0 %v603_v24  ;;  %v1875_v29 = vpop.f32.mrf.mxu0 }
 0x102   : > { %v650_v31 = vsel %vm585_vm1, %v1873_v28, 0.0  ;;  %v606_v36 = vsel %vm585_vm1, %v1875_v29, 0.0 }
 0x103   : > { %v1879_v32 = vpop.f32.mrf.mxu0  ;;  %v1881_v33 = vpop.f32.mrf.mxu1  ;;  %v651_v35 = vadd.f32 %v650_v31, %v1867_v22  ;;  %v607_v42 = vadd.f32 %v606_v36, %v1865_v21 }
 0x105   : > { %v1887_v37 = vpop.f32.mrf.mxu1  ;;  %648 = vadd.xlane.f32.xlu1 %v647_v34  ;;  %652 = vadd.xlane.f32.xlu0 %v651_v35  ;;  %v1889_v38 = vpop.f32.mrf.mxu0 }
 0x106   : > { %v610_v39 = vsel %vm585_vm1, %v1889_v38, 0.0  ;;  %v654_v44 = vsel %vm585_vm1, %v1887_v37, 0.0 }
 0x107   : > { %v1893_v40 = vpop.f32.mrf.mxu0  ;;  %v1895_v41 = vpop.f32.mrf.mxu1  ;;  %v611_v43 = vadd.f32 %v610_v39, %v1879_v32  ;;  %v655_v55 = vadd.f32 %v654_v44, %v1881_v33 }
 0x108   : > { %v1955_v44 = vpop.permute.xlu1 %1118 }
 0x109   : > { %v1901_v45 = vpop.f32.mrf.mxu1  ;;  %608 = vadd.xlane.f32.xlu1 %v607_v42  ;;  %612 = vadd.xlane.f32.xlu0 %v611_v43  ;;  %v1903_v46 = vpop.f32.mrf.mxu0  ;;  %v1948_v42 = vld [vmem:[%s1725_s13 + $0x20] sm:$0xff]  ;;  %v1952_v43 = vld [vmem:[%s1725_s13 + $0x18] sm:$0xff]  ;;  %2470 = vst [vmem:[#allocation2_spill] sm:$0xff] %v1955_v44 }
 0x10a   : > { %v658_v47 = vsel %vm585_vm1, %v1901_v45, 0.0  ;;  %v614_v59 = vsel %vm585_vm1, %v1903_v46, 0.0 }
 0x10b   : > { %v1907_v52 = vpop.f32.mrf.mxu0  ;;  %v1909_v53 = vpop.f32.mrf.mxu1  ;;  %v659_v56 = vadd.f32 %v658_v47, %v1895_v41  ;;  %v615_v11 = vadd.f32 %v614_v59, %v1893_v40 }
 0x10c   : > { %v1957_v47 = vpop.permute.xlu1 %1123 }
 0x10d   : > { %v1915_v62 = vpop.f32.mrf.mxu1  ;;  %656 = vadd.xlane.f32.xlu1 %v655_v55  ;;  %660 = vadd.xlane.f32.xlu0 %v659_v56  ;;  %v1917_v63 = vpop.f32.mrf.mxu0  ;;  %2471 = vst [vmem:[#allocation3_spill] sm:$0xff] %v1957_v47 }
 0x10e   : > { %v662_v2 = vsel %vm585_vm1, %v1915_v62, 0.0  ;;  %v618_v5 = vsel %vm585_vm1, %v1917_v63, 0.0  ;;  %v1959_v55 = vpop.permute.xlu0 %1113 }
 0x10f   : > { %v1923_v6 = vpop.f32.mrf.mxu0  ;;  %v1925_v8 = vpop.f32.mrf.mxu1  ;;  %v619_v15 = vadd.f32 %v618_v5, %v1907_v52  ;;  %v663_v20 = vadd.f32 %v662_v2, %v1909_v53 }
 0x111   : > { %v1929_v16 = vpop.f32.mrf.mxu1  ;;  %616 = vadd.xlane.f32.xlu1 %v615_v11  ;;  %620 = vadd.xlane.f32.xlu0 %v619_v15  ;;  %v1931_v17 = vpop.f32.mrf.mxu0 }
 0x112   : > { %v666_v23 = vsel %vm585_vm1, %v1929_v16, 0.0  ;;  %v622_v24 = vsel %vm585_vm1, %v1931_v17, 0.0 }
 0x113   : > { %v1938_v25 = vpop.f32.mrf.mxu0  ;;  %v667_v31 = vadd.f32 %v666_v23, %v1925_v8  ;;  %v623_v35 = vadd.f32 %v622_v24, %v1923_v6 }
 0x115   : > { %664 = vadd.xlane.f32.xlu1 %v663_v20  ;;  %668 = vadd.xlane.f32.xlu0 %v667_v31  ;;  %v1941_v34 = vpop.f32.mrf.mxu0 }
 0x116   : > { %v626_v36 = vsel %vm585_vm1, %v1941_v34, 0.0 }
 0x117   : > { %v627_v39 = vadd.f32 %v626_v36, %v1938_v25 }
 0x119   : > { %624 = vadd.xlane.f32.xlu1 %v623_v35  ;;  %628 = vadd.xlane.f32.xlu0 %v627_v39 }
 0x12a   : > { %1133 = vperm.xlu1 %1443, %v1948_v42  }
 0x12f   : > { %1128 = vperm.xlu0 %1442, %v1952_v43  }
 0x17a   : > { %v633_v56 = vpop.xlane.xlu1 %632  ;;  %v589_v59 = vpop.xlane.xlu0 %588 }
 0x17b   : > { %v681_v2 = vmul.f32 0.0051020407, %v633_v56  ;;  %v670_v5 = vmul.f32 0.0051020407, %v589_v59 }
 0x17d   : > { %v1962_v11 = vsub.f32 %v1802_v49, %v681_v2  ;;  %v1965_v15 = vsub.f32 %v1806_v51, %v681_v2  ;;  %v1968_v20 = vsub.f32 %v1800_v48, %v670_v5  ;;  %v1971_v23 = vsub.f32 %v1804_v50, %v670_v5 }
 0x17e   : > { %v593_v24 = vpop.xlane.xlu0 %592 }
 0x17f   : > { %v671_v31 = vmul.f32 0.0051020407, %v593_v24  ;;  %v733_v35 = vmul.f32 %v1968_v20, %v1968_v20  ;;  %v734_v36 = vmul.f32 %v1971_v23, %v1971_v23  ;;  %v755_v49 = vmul.f32 %v1962_v11, %v1962_v11 }
 0x180   : > { %v756_v51 = vmul.f32 %v1965_v15, %v1965_v15 }
 0x181   : > { %v1982_v48 = vsub.f32 %v1812_v54, %v671_v31  ;;  %v1985_v50 = vsub.f32 %v1820_v58, %v671_v31  ;;  %v775_v39 = vsel %vm585_vm1, %v734_v36, 0.0 }
 0x182   : > { %v637_v56 = vpop.xlane.xlu0 %636  ;;  %v597_v59 = vpop.xlane.xlu1 %596  ;;  %v776_v2 = vadd.f32 %v775_v39, %v733_v35  ;;  %v819_v5 = vsel %vm585_vm1, %v756_v51, 0.0 }
 0x183   : > { %v682_v24 = vmul.f32 0.0051020407, %v637_v56  ;;  %v672_v13 = vmul.f32 0.0051020407, %v597_v59  ;;  %v820_v47 = vadd.f32 %v819_v5, %v755_v49  ;;  %v735_v44 = vmul.f32 %v1982_v48, %v1982_v48 }
 0x184   : > { %777 = vadd.xlane.f32.xlu1 %v776_v2  ;;  %v736_v54 = vmul.f32 %v1985_v50, %v1985_v50 }
 0x185   : > { %v1994_v58 = vsub.f32 %v1814_v7, %v682_v24  ;;  %v1997_v31 = vsub.f32 %v1818_v57, %v682_v24  ;;  %v2000_v35 = vsub.f32 %v1833_v1, %v672_v13  ;;  %821 = vadd.xlane.f32.xlu0 %v820_v47  ;;  %v2003_v36 = vsub.f32 %v1824_v60, %v672_v13 }
 0x186   : > { %v645_v49 = vpop.xlane.xlu0 %644  ;;  %v641_v51 = vpop.xlane.xlu1 %640  ;;  %v779_v39 = vsel %vm585_vm1, %v736_v54, 0.0 }
 0x187   : > { %v684_v56 = vmul.f32 0.0051020407, %v645_v49  ;;  %v683_v59 = vmul.f32 0.0051020407, %v641_v51  ;;  %v780_v2 = vadd.f32 %v779_v39, %v735_v44  ;;  %v757_v7 = vmul.f32 %v1994_v58, %v1994_v58 }
 0x188   : > { %v758_v57 = vmul.f32 %v1997_v31, %v1997_v31  ;;  %v738_v1 = vmul.f32 %v2000_v35, %v2000_v35  ;;  %v737_v49 = vmul.f32 %v2003_v36, %v2003_v36 }
 0x189   : > { %v2013_v47 = vsub.f32 %v1845_v9, %v684_v56  ;;  %v2016_v13 = vsub.f32 %v1826_v61, %v683_v59  ;;  %v2019_v60 = vsub.f32 %v1831_v0, %v683_v59  ;;  %781 = vadd.xlane.f32.xlu0 %v780_v2  ;;  %v2022_v44 = vsub.f32 %v1839_v4, %v684_v56 }
 0x18a   : > { %v601_v5 = vpop.xlane.xlu1 %600  ;;  %v605_v24 = vpop.xlane.xlu0 %604  ;;  %v823_v54 = vsel %vm585_vm1, %v758_v57, 0.0  ;;  %v783_v61 = vsel %vm585_vm1, %v738_v1, 0.0 }
 0x18b   : > { %2472 = vst [vmem:[#allocation4_spill] sm:$0xff] %v2013_v47  ;;  %2473 = vst [vmem:[#allocation5_spill] sm:$0xff] %v2016_v13  ;;  %v673_v51 = vmul.f32 0.0051020407, %v601_v5  ;;  %v674_v9 = vmul.f32 0.0051020407, %v605_v24  ;;  %v824_v39 = vadd.f32 %v823_v54, %v757_v7  ;;  %v759_v0 = vmul.f32 %v2016_v13, %v2016_v13 }
 0x18c   : > { %2474 = vst [vmem:[#allocation6_spill] sm:$0xff] %v2019_v60  ;;  %v760_v59 = vmul.f32 %v2019_v60, %v2019_v60  ;;  %v762_v4 = vmul.f32 %v2013_v47, %v2013_v47  ;;  %v784_v24 = vadd.f32 %v783_v61, %v737_v49  ;;  %v761_v47 = vmul.f32 %v2022_v44, %v2022_v44 }
 0x18d   : > { %v2035_v56 = vsub.f32 %v1837_v3, %v673_v51  ;;  %v2038_v2 = vsub.f32 %v1847_v10, %v673_v51  ;;  %v2041_v57 = vsub.f32 %v1861_v19, %v674_v9  ;;  %825 = vadd.xlane.f32.xlu1 %v824_v39  ;;  %v2044_v7 = vsub.f32 %v1851_v12, %v674_v9 }
 0x18e   : > { %v649_v1 = vpop.xlane.xlu1 %648  ;;  %v653_v5 = vpop.xlane.xlu0 %652  ;;  %v827_v54 = vsel %vm585_vm1, %v760_v59, 0.0  ;;  %v831_v10 = vsel %vm585_vm1, %v762_v4, 0.0 }
 0x18f   : > { %v685_v3 = vmul.f32 0.0051020407, %v649_v1  ;;  %v686_v60 = vmul.f32 0.0051020407, %v653_v5  ;;  %v828_v13 = vadd.f32 %v827_v54, %v759_v0  ;;  %v739_v19 = vmul.f32 %v2035_v56, %v2035_v56 }
 0x190   : > { %v740_v12 = vmul.f32 %v2038_v2, %v2038_v2  ;;  %v742_v51 = vmul.f32 %v2041_v57, %v2041_v57  ;;  %v832_v4 = vadd.f32 %v831_v10, %v761_v47 }
 0x191   : > { %v2057_v49 = vsub.f32 %v1853_v14, %v685_v3  ;;  %v2060_v9 = vsub.f32 %v1859_v18, %v685_v3  ;;  %v2063_v39 = vsub.f32 %v1873_v28, %v686_v60  ;;  %785 = vadd.xlane.f32.xlu1 %v784_v24  ;;  %v2066_v61 = vsub.f32 %v1867_v22, %v686_v60 }
 0x192   : > { %829 = vadd.xlane.f32.xlu0 %v828_v13  ;;  %v609_v0 = vpop.xlane.xlu1 %608  ;;  %v613_v59 = vpop.xlane.xlu0 %612  ;;  %v787_v1 = vsel %vm585_vm1, %v740_v12, 0.0  ;;  %v741_v14 = vmul.f32 %v2044_v7, %v2044_v7  ;;  %v791_v3 = vsel %vm585_vm1, %v742_v51, 0.0 }
 0x193   : > { %v675_v5 = vmul.f32 0.0051020407, %v609_v0  ;;  %v676_v54 = vmul.f32 0.0051020407, %v613_v59  ;;  %v788_v18 = vadd.f32 %v787_v1, %v739_v19  ;;  %v763_v28 = vmul.f32 %v2057_v49, %v2057_v49 }
 0x194   : > { %v764_v22 = vmul.f32 %v2060_v9, %v2060_v9  ;;  %v766_v13 = vmul.f32 %v2063_v39, %v2063_v39  ;;  %v792_v51 = vadd.f32 %v791_v3, %v741_v14 }
 0x195   : > { %v2079_v47 = vsub.f32 %v1865_v21, %v675_v5  ;;  %v2082_v60 = vsub.f32 %v1875_v29, %v675_v5  ;;  %v2085_v24 = vsub.f32 %v1889_v38, %v676_v54  ;;  %833 = vadd.xlane.f32.xlu1 %v832_v4  ;;  %v2088_v10 = vsub.f32 %v1879_v32, %v676_v54 }
 0x196   : > { %789 = vadd.xlane.f32.xlu0 %v788_v18  ;;  %v657_v19 = vpop.xlane.xlu1 %656  ;;  %v661_v12 = vpop.xlane.xlu0 %660  ;;  %v835_v0 = vsel %vm585_vm1, %v764_v22, 0.0  ;;  %v765_v21 = vmul.f32 %v2066_v61, %v2066_v61  ;;  %v839_v5 = vsel %vm585_vm1, %v766_v13, 0.0 }
 0x197   : > { %2475 = vst [vmem:[#allocation7_spill] sm:$0xff] %v2085_v24  ;;  %v687_v59 = vmul.f32 0.0051020407, %v657_v19  ;;  %v688_v1 = vmul.f32 0.0051020407, %v661_v12  ;;  %v836_v29 = vadd.f32 %v835_v0, %v763_v28  ;;  %v743_v38 = vmul.f32 %v2079_v47, %v2079_v47 }
 0x198   : > { %v744_v32 = vmul.f32 %v2082_v60, %v2082_v60  ;;  %v746_v4 = vmul.f32 %v2085_v24, %v2085_v24  ;;  %v840_v13 = vadd.f32 %v839_v5, %v765_v21 }
 0x199   : > { %v2101_v14 = vsub.f32 %v1881_v33, %v687_v59  ;;  %v2104_v54 = vsub.f32 %v1887_v37, %v687_v59  ;;  %v2107_v18 = vsub.f32 %v1901_v45, %v688_v1  ;;  %793 = vadd.xlane.f32.xlu1 %v792_v51  ;;  %v2110_v3 = vsub.f32 %v1895_v41, %v688_v1 }
 0x19a   : > { %837 = vadd.xlane.f32.xlu0 %v836_v29  ;;  %v617_v28 = vpop.xlane.xlu1 %616  ;;  %v621_v22 = vpop.xlane.xlu0 %620  ;;  %v795_v19 = vsel %vm585_vm1, %v744_v32, 0.0  ;;  %v745_v33 = vmul.f32 %v2088_v10, %v2088_v10  ;;  %v799_v59 = vsel %vm585_vm1, %v746_v4, 0.0 }
 0x19b   : > { %2476 = vst [vmem:[#allocation8_spill] sm:$0xff] %v2107_v18  ;;  %2477 = vst [vmem:[#allocation9_spill] sm:$0xff] %v2110_v3  ;;  %v677_v12 = vmul.f32 0.0051020407, %v617_v28  ;;  %v678_v0 = vmul.f32 0.0051020407, %v621_v22  ;;  %v796_v37 = vadd.f32 %v795_v19, %v743_v38  ;;  %v767_v45 = vmul.f32 %v2101_v14, %v2101_v14 }
 0x19c   : > { %v768_v41 = vmul.f32 %v2104_v54, %v2104_v54  ;;  %v770_v51 = vmul.f32 %v2107_v18, %v2107_v18  ;;  %v800_v38 = vadd.f32 %v799_v59, %v745_v33 }
 0x19d   : > { %v2123_v21 = vsub.f32 %v1893_v40, %v677_v12  ;;  %v2126_v1 = vsub.f32 %v1903_v46, %v677_v12  ;;  %v2129_v29 = vsub.f32 %v1917_v63, %v678_v0  ;;  %841 = vadd.xlane.f32.xlu1 %v840_v13  ;;  %v2133_v4 = vsub.f32 %v1907_v52, %v678_v0 }
 0x19e   : > { %797 = vadd.xlane.f32.xlu0 %v796_v37  ;;  %v665_v5 = vpop.xlane.xlu1 %664  ;;  %v843_v32 = vsel %vm585_vm1, %v768_v41, 0.0  ;;  %v769_v40 = vmul.f32 %v2110_v3, %v2110_v3  ;;  %v847_v46 = vsel %vm585_vm1, %v770_v51, 0.0 }
 0x19f   : > { %2478 = vst [vmem:[#allocation10_spill] sm:$0xff] %v2123_v21  ;;  %2479 = vst [vmem:[#allocation11_spill] sm:$0xff] %v2126_v1  ;;  %v689_v28 = vmul.f32 0.0051020407, %v665_v5  ;;  %v844_v22 = vadd.f32 %v843_v32, %v767_v45  ;;  %v747_v63 = vmul.f32 %v2123_v21, %v2123_v21  ;;  %v748_v13 = vmul.f32 %v2126_v1, %v2126_v1 }
 0x1a0   : > { %2480 = vst [vmem:[#allocation12_spill] sm:$0xff] %v2129_v29  ;;  %2481 = vst [vmem:[#allocation13_spill] sm:$0xff] %v2133_v4  ;;  %v750_v19 = vmul.f32 %v2129_v29, %v2129_v29  ;;  %v848_v59 = vadd.f32 %v847_v46, %v769_v40  ;;  %v749_v41 = vmul.f32 %v2133_v4, %v2133_v4 }
 0x1a1   : > { %v2145_v33 = vsub.f32 %v1909_v53, %v689_v28  ;;  %v2148_v52 = vsub.f32 %v1915_v62, %v689_v28  ;;  %801 = vadd.xlane.f32.xlu1 %v800_v38  ;;  %v803_v0 = vsel %vm585_vm1, %v748_v13, 0.0  ;;  %v2175_v13 = vld [vmem:[%s1725_s13 + $0x40] sm:$0xff] }
 0x1a2   : > { %845 = vadd.xlane.f32.xlu0 %v844_v22  ;;  %v625_v12 = vpop.xlane.xlu1 %624  ;;  %v804_v45 = vadd.f32 %v803_v0, %v747_v63  ;;  %v807_v51 = vsel %vm585_vm1, %v750_v19, 0.0  ;;  %v2171_v63 = vld [vmem:[%s1725_s13 + $0x30] sm:$0xff]  ;;  %v2186_v0 = vld [vmem:[%s1725_s13 + $0x60] sm:$0xff] }
 0x1a3   : > { %2482 = vst [vmem:[#allocation14_spill] sm:$0xff] %v2145_v33  ;;  %2483 = vst [vmem:[#allocation15_spill] sm:$0xff] %v2148_v52  ;;  %v679_v37 = vmul.f32 0.0051020407, %v625_v12  ;;  %v771_v53 = vmul.f32 %v2145_v33, %v2145_v33  ;;  %v772_v62 = vmul.f32 %v2148_v52, %v2148_v52  ;;  %v808_v28 = vadd.f32 %v807_v51, %v749_v41  ;;  %v2179_v19 = vld [vmem:[%s1725_s13 + $0x50] sm:$0xff]  ;;  %v2182_v12 = vld [vmem:[%s1725_s13 + $0x28] sm:$0xff] }
 0x1a4   : > { %v2202_v41 = vld [vmem:[%s1725_s13 + $0x80] sm:$0xff]  ;;  %v2206_v51 = vld [vmem:[%s1725_s13 + $0x58] sm:$0xff] }
 0x1a5   : > { %v2159_v5 = vsub.f32 %v1923_v6, %v679_v37  ;;  %v2162_v38 = vsub.f32 %v1931_v17, %v679_v37  ;;  %849 = vadd.xlane.f32.xlu1 %v848_v59  ;;  %v851_v32 = vsel %vm585_vm1, %v772_v62, 0.0  ;;  %v2190_v37 = vld [vmem:[%s1725_s13 + $0x38] sm:$0xff]  ;;  %v2194_v59 = vld [vmem:[%s1725_s13 + $0x70] sm:$0xff]  ;;  %v2214_v62 = vld [vmem:[%s1725_s13 + $0x68] sm:$0xff] }
 0x1a6   : > { %805 = vadd.xlane.f32.xlu0 %v804_v45  ;;  %v852_v22 = vadd.f32 %v851_v32, %v771_v53  ;;  %v2198_v45 = vld [vmem:[%s1725_s13 + $0x48] sm:$0xff]  ;;  %v2210_v53 = vld [vmem:[%s1725_s13 + $0x90] sm:$0xff]  ;;  %v2219_v32 = vld [vmem:[%s1725_s13 + $0x78] sm:$0xff] }
 0x1a7   : > { %2484 = vst [vmem:[#allocation16_spill] sm:$0xff] %v2159_v5  ;;  %2485 = vst [vmem:[#allocation17_spill] sm:$0xff] %v2162_v38  ;;  %v751_v40 = vmul.f32 %v2159_v5, %v2159_v5  ;;  %v752_v6 = vmul.f32 %v2162_v38, %v2162_v38 }
 0x1a9   : > { %809 = vadd.xlane.f32.xlu1 %v808_v28  ;;  %v811_v17 = vsel %vm585_vm1, %v752_v6, 0.0  ;;  %v1500_v28 = vmov 0  }
 0x1aa   : > { %853 = vadd.xlane.f32.xlu0 %v852_v22  ;;  %v812_v46 = vadd.f32 %v811_v17, %v751_v40  ;;  %v2223_v22 = vld [vmem:[%s1725_s13 + $0x88] sm:$0xff]  ;;  %v669_v40 = vpop.xlane.xlu0 %668 }
 0x1ab   : > { %v690_v6 = vmul.f32 0.0051020407, %v669_v40 }
 0x1ad   : > { %v2230_v4 = vsub.f32 %v1925_v8, %v690_v6 }
 0x1ae   : > { %813 = vadd.xlane.f32.xlu0 %v812_v46  ;;  %v629_v17 = vpop.xlane.xlu0 %628  ;;  %v2227_v46 = vsub.f32 %v1929_v16, %v690_v6 }
 0x1af   : > { %v680_v29 = vmul.f32 0.0051020407, %v629_v17  ;;  %2487 = vst [vmem:[#allocation19_spill] sm:$0xff] %v2230_v4 }
 0x1b0   : > { %2486 = vst [vmem:[#allocation18_spill] sm:$0xff] %v2227_v46  ;;  %v774_v3 = vmul.f32 %v2227_v46, %v2227_v46  ;;  %v2248_v46 = vpop.permute.xlu1 %1133 }
 0x1b1   : > { %v2233_v18 = vsub.f32 %v1941_v34, %v680_v29  ;;  %v2238_v52 = vsub.f32 %v1938_v25, %v680_v29 }
 0x1b2   : > { %v855_v40 = vsel %vm585_vm1, %v774_v3, 0.0  ;;  %v2250_v25 = vpop.permute.xlu0 %1128 }
 0x1b3   : > { %2488 = vst [vmem:[#allocation20_spill] sm:$0xff] %v2233_v18  ;;  %2489 = vst [vmem:[#allocation21_spill] sm:$0xff] %v2238_v52  ;;  %v754_v16 = vmul.f32 %v2233_v18, %v2233_v18  ;;  %v753_v8 = vmul.f32 %v2238_v52, %v2238_v52 }
 0x1b5   : > { %v815_v34 = vsel %vm585_vm1, %v754_v16, 0.0 }
 0x1b6   : > { %v816_v6 = vadd.f32 %v815_v34, %v753_v8 }
 0x1ba   : > { %1143 = vperm.xlu1 %1443, %v2171_v63  }
 0x1be   : > { %1153 = vperm.xlu1 %1443, %v2175_v13  }
 0x1c2   : > { %1163 = vperm.xlu1 %1443, %v2179_v19  }
 0x1c4   : > { %1138 = vperm.xlu0 %1442, %v2182_v12  }
 0x1c6   : > { %1173 = vperm.xlu1 %1443, %v2186_v0  }
 0x1c8   : > { %1148 = vperm.xlu0 %1442, %v2190_v37  }
 0x1ca   : > { %1183 = vperm.xlu1 %1443, %v2194_v59  }
 0x1cc   : > { %1158 = vperm.xlu0 %1442, %v2198_v45  }
 0x1ce   : > { %1193 = vperm.xlu1 %1443, %v2202_v41  }
 0x1d0   : > { %1168 = vperm.xlu0 %1442, %v2206_v51  }
 0x1d2   : > { %1203 = vperm.xlu1 %1443, %v2210_v53  }
 0x1d4   : > { %1178 = vperm.xlu0 %1442, %v2214_v62  }
 0x1d6   : > { %1445 = vset.pattern.permute.xlu1 %v1500_v28 }
 0x1d8   : > { %1188 = vperm.xlu0 %1442, %v2219_v32  }
 0x1dc   : > { %1198 = vperm.xlu0 %1442, %v2223_v22  }
 0x1e0   : > { %1444 = vset.pattern.permute.xlu0 %v1500_v28  ;;  %v773_v28 = vmul.f32 %v2230_v4, %v2230_v4 }
 0x1e2   : > { %v856_v17 = vadd.f32 %v855_v40, %v773_v28 }
 0x1f6   : > { %857 = vadd.xlane.f32.xlu1 %v856_v17 }
 0x1fa   : > { %817 = vadd.xlane.f32.xlu1 %v816_v6 }
 0x20d   : > { %v778_v29 = vpop.xlane.xlu1 %777 }
 0x20e   : > { %v859_v4 = vmul.f32 0.0051020407, %v778_v29  ;;  %v822_v33 = vpop.xlane.xlu0 %821 }
 0x20f   : > { %v870_v3 = vmul.f32 0.0051020407, %v822_v33 }
 0x210   : > { %v901_v38 = vadd.f32 0.001, %v859_v4 }
 0x211   : > { %v912_v5 = vadd.f32 0.001, %v870_v3 }
 0x212   : > { %1448 = vrsqrt.f32 %v901_v38  ;;  %v782_v28 = vpop.xlane.xlu0 %781 }
 0x213   : > { %v860_v40 = vmul.f32 0.0051020407, %v782_v28  ;;  %1450 = vrsqrt.f32 %v912_v5 }
 0x215   : > { %v902_v18 = vadd.f32 0.001, %v860_v40 }
 0x216   : > { %v826_v52 = vpop.xlane.xlu1 %825 }
 0x217   : > { %1452 = vrsqrt.f32 %v902_v18  ;;  %v871_v16 = vmul.f32 0.0051020407, %v826_v52 }
 0x219   : > { %v913_v17 = vadd.f32 0.001, %v871_v16 }
 0x21a   : > { %v786_v8 = vpop.xlane.xlu1 %785 }
 0x21b   : > { %1454 = vrsqrt.f32 %v913_v17  ;;  %v861_v34 = vmul.f32 0.0051020407, %v786_v8  ;;  %v830_v6 = vpop.xlane.xlu0 %829 }
 0x21c   : > { %v872_v1 = vmul.f32 0.0051020407, %v830_v6 }
 0x21d   : > { %v903_v21 = vadd.f32 0.001, %v861_v34 }
 0x21e   : > { %v914_v29 = vadd.f32 0.001, %v872_v1  ;;  %v834_v24 = vpop.xlane.xlu1 %833 }
 0x21f   : > { %v1449_v33 = vpop.eup %1448  ;;  %1456 = vrsqrt.f32 %v903_v21  ;;  %v873_v4 = vmul.f32 0.0051020407, %v834_v24  ;;  %v790_v38 = vpop.xlane.xlu0 %789 }
 0x220   : > { %1458 = vrsqrt.f32 %v914_v29  ;;  %v862_v3 = vmul.f32 0.0051020407, %v790_v38  ;;  %v943_v5 = vmul.f32 %v1449_v33, %v1733_v27  ;;  %v1451_v28 = vpop.eup %1450 }
 0x221   : > { %v915_v18 = vadd.f32 0.001, %v873_v4  ;;  %v954_v1 = vmul.f32 %v1451_v28, %v2206_v51 }
 0x222   : > { %v904_v52 = vadd.f32 0.001, %v862_v3  ;;  %v794_v40 = vpop.xlane.xlu1 %793  ;;  %966 = vperm.xlu0 %1444, %v943_v5  }
 0x223   : > { %v863_v16 = vmul.f32 0.0051020407, %v794_v40  ;;  %v838_v17 = vpop.xlane.xlu0 %837 }
 0x224   : > { %v1453_v8 = vpop.eup %1452  ;;  %1460 = vrsqrt.f32 %v904_v52  ;;  %v874_v34 = vmul.f32 0.0051020407, %v838_v17 }
 0x225   : > { %v944_v21 = vmul.f32 %v1453_v8, %v1730_v26  ;;  %1462 = vrsqrt.f32 %v915_v18  ;;  %v905_v24 = vadd.f32 0.001, %v863_v16 }
 0x226   : > { %v916_v6 = vadd.f32 0.001, %v874_v34  ;;  %v842_v29 = vpop.xlane.xlu1 %841  ;;  %1021 = vperm.xlu0 %1444, %v954_v1  }
 0x227   : > { %v798_v27 = vpop.xlane.xlu0 %797  ;;  %971 = vperm.xlu1 %1445, %v944_v21   ;;  %v875_v3 = vmul.f32 0.0051020407, %v842_v29 }
 0x228   : > { %v1455_v33 = vpop.eup %1454  ;;  %1464 = vrsqrt.f32 %v916_v6  ;;  %v864_v4 = vmul.f32 0.0051020407, %v798_v27 }
 0x229   : > { %v955_v38 = vmul.f32 %v1455_v33, %v2186_v0  ;;  %1466 = vrsqrt.f32 %v905_v24  ;;  %v917_v17 = vadd.f32 0.001, %v875_v3 }
 0x22a   : > { %v906_v5 = vadd.f32 0.001, %v864_v4  ;;  %v802_v52 = vpop.xlane.xlu1 %801 }
 0x22b   : > { %v846_v40 = vpop.xlane.xlu0 %845  ;;  %1026 = vperm.xlu1 %1445, %v955_v38   ;;  %v865_v18 = vmul.f32 0.0051020407, %v802_v52 }
 0x22c   : > { %v1457_v51 = vpop.eup %1456  ;;  %v876_v26 = vmul.f32 0.0051020407, %v846_v40  ;;  %1468 = vrsqrt.f32 %v906_v5 }
 0x22d   : > { %v1459_v28 = vpop.eup %1458  ;;  %v945_v16 = vmul.f32 %v1457_v51, %v1744_v30  ;;  %v907_v21 = vadd.f32 0.001, %v865_v18 }
 0x22e   : > { %v918_v8 = vadd.f32 0.001, %v876_v26  ;;  %v956_v34 = vmul.f32 %v1459_v28, %v2214_v62  ;;  %v850_v24 = vpop.xlane.xlu1 %849 }
 0x22f   : > { %v806_v1 = vpop.xlane.xlu0 %805  ;;  %976 = vperm.xlu1 %1445, %v945_v16   ;;  %v877_v38 = vmul.f32 0.0051020407, %v850_v24 }
 0x230   : > { %1470 = vrsqrt.f32 %v918_v8  ;;  %1031 = vperm.xlu0 %1444, %v956_v34   ;;  %v866_v6 = vmul.f32 0.0051020407, %v806_v1 }
 0x231   : > { %v1461_v0 = vpop.eup %1460  ;;  %1472 = vrsqrt.f32 %v917_v17 }
 0x232   : > { %v946_v29 = vmul.f32 %v1461_v0, %v1952_v43  ;;  %v1463_v27 = vpop.eup %1462  ;;  %1474 = vrsqrt.f32 %v907_v21  ;;  %v908_v3 = vadd.f32 0.001, %v866_v6  ;;  %v810_v51 = vpop.xlane.xlu1 %809  ;;  %v919_v43 = vadd.f32 0.001, %v877_v38  ;;  %v899_v6 = vld [vmem:[%s1725_s13 + $0x98] sm:$0xff] }
 0x233   : > { %v854_v33 = vpop.xlane.xlu0 %853  ;;  %v957_v5 = vmul.f32 %v1463_v27, %v2194_v59  ;;  %v867_v18 = vmul.f32 0.0051020407, %v810_v51 }
 0x234   : > { %v878_v4 = vmul.f32 0.0051020407, %v854_v33  ;;  %981 = vperm.xlu1 %1445, %v946_v29  }
 0x235   : > { %v1465_v30 = vpop.eup %1464 }
 0x236   : > { %v920_v62 = vadd.f32 0.001, %v878_v4  ;;  %v958_v52 = vmul.f32 %v1465_v30, %v2219_v32  ;;  %v1467_v40 = vpop.eup %1466  ;;  %v909_v32 = vadd.f32 0.001, %v867_v18 }
 0x237   : > { %v814_v26 = vpop.xlane.xlu0 %813  ;;  %v947_v17 = vmul.f32 %v1467_v40, %v1948_v42 }
 0x238   : > { %1476 = vrsqrt.f32 %v920_v62  ;;  %v868_v28 = vmul.f32 0.0051020407, %v814_v26  ;;  %1036 = vperm.xlu1 %1445, %v957_v5   ;;  %1041 = vperm.xlu0 %1444, %v958_v52   ;;  %v2272_v62 = vpop.permute.xlu1 %1143 }
 0x239   : > { %1478 = vrsqrt.f32 %v908_v3  ;;  %v1469_v8 = vpop.eup %1468  ;;  %v2490_v3 = vmov 1  }
 0x23a   : > { %v910_v16 = vadd.f32 0.001, %v868_v28  ;;  %v948_v34 = vmul.f32 %v1469_v8, %v2182_v12 }
 0x23c   : > { %1480 = vrsqrt.f32 %v910_v16  ;;  %986 = vperm.xlu1 %1445, %v947_v17   ;;  %v2274_v5 = vpop.permute.xlu1 %1153 }
 0x23d   : > { %v1471_v59 = vpop.eup %1470  ;;  %1482 = vrsqrt.f32 %v919_v43 }
 0x23e   : > { %v960_v1 = vmul.f32 %v1471_v59, %v2223_v22  ;;  %v1473_v0 = vpop.eup %1472  ;;  %1484 = vrsqrt.f32 %v909_v32 }
 0x23f   : > { %v1475_v21 = vpop.eup %1474  ;;  %v959_v24 = vmul.f32 %v1473_v0, %v2202_v41  ;;  %v2280_v40 = vpop.permute.xlu0 %1138 }
 0x240   : > { %991 = vperm.xlu1 %1445, %v948_v34   ;;  %1051 = vperm.xlu0 %1444, %v960_v1   ;;  %v949_v29 = vmul.f32 %v1475_v21, %v2171_v63  ;;  %v900_v34 = vld [vmem:[%s1725_s13 + $0xa0] sm:$0xff] }
 0x243   : > { %v2284_v51 = vpop.permute.xlu0 %1148 }
 0x244   : > { %1046 = vperm.xlu1 %1445, %v959_v24  }
 0x245   : > { %v1477_v42 = vpop.eup %1476 }
 0x246   : > { %v962_v27 = vmul.f32 %v1477_v42, %v899_v6  ;;  %v1479_v33 = vpop.eup %1478 }
 0x247   : > { %v950_v12 = vmul.f32 %v1479_v33, %v2190_v37  ;;  %v2276_v37 = vpop.permute.xlu1 %1163  ;;  %v2288_v43 = vpop.permute.xlu0 %1158 }
 0x248   : > { %996 = vperm.xlu1 %1445, %v949_v29   ;;  %1061 = vperm.xlu0 %1444, %v962_v27  }
 0x249   : > { %v1481_v4 = vpop.eup %1480 }
 0x24a   : > { %v952_v22 = vmul.f32 %v1481_v4, %v2198_v45  ;;  %v1483_v30 = vpop.eup %1482 }
 0x24b   : > { %v961_v38 = vmul.f32 %v1483_v30, %v2210_v53  ;;  %v1485_v41 = vpop.eup %1484  ;;  %v1174_v45 = vpop.permute.xlu1 %1173 }
 0x24c   : > { %1001 = vperm.xlu1 %1445, %v950_v12   ;;  %1011 = vperm.xlu0 %1444, %v952_v22   ;;  %v951_v63 = vmul.f32 %v1485_v41, %v2175_v13  ;;  %v1169_v59 = vpop.permute.xlu0 %1168 }
 0x24f   : > { %v2278_v52 = vpop.permute.xlu1 %1183 }
 0x250   : > { %1056 = vperm.xlu1 %1445, %v961_v38   ;;  %1446 = vset.pattern.permute.xlu0 %v2490_v3  ;;  %v1179_v32 = vpop.permute.xlu0 %1178 }
 0x251   : > { %1208 = vperm.xlu0 %1446, %v899_v6  }
 0x253   : > { %v2282_v53 = vpop.permute.xlu1 %1193 }
 0x254   : > { %1006 = vperm.xlu1 %1445, %v951_v63   ;;  %v2291_v21 = vpop.permute.xlu0 %1188 }
 0x257   : > { %v2286_v26 = vpop.permute.xlu1 %1203 }
 0x258   : > { %v2294_v42 = vpop.permute.xlu0 %1198 }
 0x27f   : > { %v858_v13 = vpop.xlane.xlu1 %857 }
 0x280   : > { %v879_v28 = vmul.f32 0.0051020407, %v858_v13 }
 0x282   : > { %v921_v18 = vadd.f32 0.001, %v879_v28 }
 0x283   : > { %v818_v16 = vpop.xlane.xlu1 %817 }
 0x284   : > { %1486 = vrsqrt.f32 %v921_v18  ;;  %v869_v17 = vmul.f32 0.0051020407, %v818_v16 }
 0x286   : > { %v911_v8 = vadd.f32 0.001, %v869_v17 }
 0x288   : > { %1488 = vrsqrt.f32 %v911_v8 }
 0x291   : > { %v1487_v1 = vpop.eup %1486 }
 0x292   : > { %v963_v0 = vmul.f32 %v1487_v1, %v900_v34 }
 0x294   : > { %1066 = vperm.xlu1 %1445, %v963_v0   ;;  %v2494_v0 = vld [vmem:[#allocation3_spill] sm:$0xff] }
 0x295   : > { %v1489_v24 = vpop.eup %1488 }
 0x296   : > { %v953_v6 = vmul.f32 %v1489_v24, %v2179_v19 }
 0x298   : > { %1016 = vperm.xlu1 %1445, %v953_v6  }
 0x29c   : > { %1447 = vset.pattern.permute.xlu1 %v2490_v3 }
 0x29d   : > { %1213 = vperm.xlu1 %1447, %v900_v34   ;;  %v967_v29 = vpop.permute.xlu0 %966 }
 0x29e   : > { %v1069_v27 = vmul.f32 %v967_v29, %v1968_v20  ;;  %v1070_v33 = vmul.f32 %v967_v29, %v1971_v23 }
 0x2a0   : > { %v1216_v19 = vadd.f32 %v1959_v55, %v1069_v27  ;;  %v1217_v4 = vadd.f32 %v1959_v55, %v1070_v33  ;;  %v2491_v55 = vld [vmem:[#allocation2_spill] sm:$0xff] }
 0x2a1   : > { %v1022_v12 = vpop.permute.xlu0 %1021 }
 0x2a2   : > { %1258 = vst [vmem:[%s2303_s19] sm:$0xff] %v1216_v19  ;;  %1259 = vst.msk [vmem:[%s2303_s19 + $0x8] sm:$0xff] %vm585_vm1, %v1217_v4  ;;  %v972_v20 = vpop.permute.xlu1 %971  ;;  %v1091_v23 = vmul.f32 %v1022_v12, %v1962_v11  ;;  %v1092_v22 = vmul.f32 %v1022_v12, %v1965_v15  ;;  %v2495_v12 = vld [vmem:[#allocation4_spill] sm:$0xff] }
 0x2a3   : > { %v1071_v30 = vmul.f32 %v972_v20, %v1982_v48  ;;  %v1072_v38 = vmul.f32 %v972_v20, %v1985_v50 }
 0x2a4   : > { %v1238_v41 = vadd.f32 %v1169_v59, %v1091_v23  ;;  %v1239_v3 = vadd.f32 %v1169_v59, %v1092_v22  ;;  %v2492_v59 = vld [vmem:[#allocation5_spill] sm:$0xff] }
 0x2a5   : > { %v1218_v63 = vadd.f32 %v2491_v55, %v1071_v30  ;;  %v1219_v13 = vadd.f32 %v2491_v55, %v1072_v38 }
 0x2a6   : > { %1280 = vst [vmem:[%s2303_s19 + $0xb0] sm:$0xff] %v1238_v41  ;;  %1281 = vst.msk [vmem:[%s2303_s19 + $0xb8] sm:$0xff] %vm585_vm1, %v1239_v3  ;;  %v1027_v28 = vpop.permute.xlu1 %1026 }
 0x2a7   : > { %1260 = vst [vmem:[%s2303_s19 + $0x10] sm:$0xff] %v1218_v63  ;;  %1261 = vst.msk [vmem:[%s2303_s19 + $0x18] sm:$0xff] %vm585_vm1, %v1219_v13  ;;  %v1093_v11 = vmul.f32 %v1027_v28, %v1994_v58  ;;  %v1094_v15 = vmul.f32 %v1027_v28, %v1997_v31  ;;  %v2493_v58 = vld [vmem:[#allocation6_spill] sm:$0xff] }
 0x2a9   : > { %v1240_v48 = vadd.f32 %v1174_v45, %v1093_v11  ;;  %v1241_v50 = vadd.f32 %v1174_v45, %v1094_v15 }
 0x2aa   : > { %v977_v18 = vpop.permute.xlu1 %976 }
 0x2ab   : > { %1282 = vst [vmem:[%s2303_s19 + $0xc0] sm:$0xff] %v1240_v48  ;;  %1283 = vst.msk [vmem:[%s2303_s19 + $0xc8] sm:$0xff] %vm585_vm1, %v1241_v50  ;;  %v1073_v16 = vmul.f32 %v977_v18, %v2003_v36  ;;  %v1074_v17 = vmul.f32 %v977_v18, %v2000_v35  ;;  %v1032_v8 = vpop.permute.xlu0 %1031  ;;  %v2496_v48 = vld [vmem:[#allocation7_spill] sm:$0xff] }
 0x2ac   : > { %v1095_v34 = vmul.f32 %v1032_v8, %v2492_v59  ;;  %v1096_v1 = vmul.f32 %v1032_v8, %v2493_v58  ;;  %v2498_v8 = vld [vmem:[#allocation11_spill] sm:$0xff]  ;;  %v2500_v58 = vld [vmem:[#allocation17_spill] sm:$0xff] }
 0x2ad   : > { %v1220_v31 = vadd.f32 %v2494_v0, %v1073_v16  ;;  %v1221_v45 = vadd.f32 %v2494_v0, %v1074_v17 }
 0x2ae   : > { %v1242_v24 = vadd.f32 %v1179_v32, %v1095_v34  ;;  %v1243_v6 = vadd.f32 %v1179_v32, %v1096_v1 }
 0x2af   : > { %1262 = vst [vmem:[%s2303_s19 + $0x20] sm:$0xff] %v1220_v31  ;;  %1263 = vst.msk [vmem:[%s2303_s19 + $0x28] sm:$0xff] %vm585_vm1, %v1221_v45  ;;  %v982_v29 = vpop.permute.xlu1 %981 }
 0x2b0   : > { %1284 = vst [vmem:[%s2303_s19 + $0xd0] sm:$0xff] %v1242_v24  ;;  %1285 = vst.msk [vmem:[%s2303_s19 + $0xd8] sm:$0xff] %vm585_vm1, %v1243_v6  ;;  %v1075_v35 = vmul.f32 %v982_v29, %v2035_v56  ;;  %v1076_v36 = vmul.f32 %v982_v29, %v2038_v2  ;;  %v2501_v24 = vld [vmem:[#allocation14_spill] sm:$0xff]  ;;  %v2502_v29 = vld [vmem:[#allocation15_spill] sm:$0xff] }
 0x2b2   : > { %v1222_v27 = vadd.f32 %v2250_v25, %v1075_v35  ;;  %v1223_v33 = vadd.f32 %v2250_v25, %v1076_v36 }
 0x2b3   : > { %v1037_v19 = vpop.permute.xlu1 %1036  ;;  %v1042_v32 = vpop.permute.xlu0 %1041 }
 0x2b4   : > { %1264 = vst [vmem:[%s2303_s19 + $0x30] sm:$0xff] %v1222_v27  ;;  %1265 = vst.msk [vmem:[%s2303_s19 + $0x38] sm:$0xff] %vm585_vm1, %v1223_v33  ;;  %v1097_v4 = vmul.f32 %v1037_v19, %v2022_v44  ;;  %v1098_v20 = vmul.f32 %v1037_v19, %v2495_v12  ;;  %v1099_v56 = vmul.f32 %v1042_v32, %v2057_v49  ;;  %v2504_v33 = vld [vmem:[#allocation8_spill] sm:$0xff] }
 0x2b5   : > { %v1100_v2 = vmul.f32 %v1042_v32, %v2060_v9 }
 0x2b6   : > { %v1244_v23 = vadd.f32 %v2278_v52, %v1097_v4  ;;  %v1245_v25 = vadd.f32 %v2278_v52, %v1098_v20  ;;  %v1246_v22 = vadd.f32 %v2291_v21, %v1099_v56 }
 0x2b7   : > { %v1247_v30 = vadd.f32 %v2291_v21, %v1100_v2  ;;  %v987_v38 = vpop.permute.xlu1 %986  ;;  %v2505_v2 = vld [vmem:[#allocation13_spill] sm:$0xff] }
 0x2b8   : > { %1286 = vst [vmem:[%s2303_s19 + $0xe0] sm:$0xff] %v1244_v23  ;;  %1287 = vst.msk [vmem:[%s2303_s19 + $0xe8] sm:$0xff] %vm585_vm1, %v1245_v25  ;;  %v1077_v44 = vmul.f32 %v987_v38, %v2044_v7  ;;  %v1078_v49 = vmul.f32 %v987_v38, %v2041_v57  ;;  %v2506_v25 = vld [vmem:[#allocation12_spill] sm:$0xff] }
 0x2b9   : > { %1288 = vst [vmem:[%s2303_s19 + $0xf0] sm:$0xff] %v1246_v22  ;;  %1289 = vst.msk [vmem:[%s2303_s19 + $0xf8] sm:$0xff] %vm585_vm1, %v1247_v30 }
 0x2ba   : > { %v1224_v9 = vadd.f32 %v2248_v46, %v1077_v44  ;;  %v1225_v52 = vadd.f32 %v2248_v46, %v1078_v49  ;;  %v2507_v49 = vld [vmem:[#allocation21_spill] sm:$0xff] }
 0x2bb   : > { %v992_v41 = vpop.permute.xlu1 %991  ;;  %v1052_v21 = vpop.permute.xlu0 %1051 }
 0x2bc   : > { %1266 = vst [vmem:[%s2303_s19 + $0x40] sm:$0xff] %v1224_v9  ;;  %1267 = vst.msk [vmem:[%s2303_s19 + $0x48] sm:$0xff] %vm585_vm1, %v1225_v52  ;;  %v1079_v3 = vmul.f32 %v992_v41, %v2079_v47  ;;  %v1080_v55 = vmul.f32 %v992_v41, %v2082_v60  ;;  %v1103_v7 = vmul.f32 %v1052_v21, %v2101_v14  ;;  %v2508_v52 = vld [vmem:[#allocation20_spill] sm:$0xff] }
 0x2bd   : > { %v1104_v57 = vmul.f32 %v1052_v21, %v2104_v54 }
 0x2be   : > { %v1226_v63 = vadd.f32 %v2280_v40, %v1079_v3  ;;  %v1227_v46 = vadd.f32 %v2280_v40, %v1080_v55  ;;  %v1250_v13 = vadd.f32 %v2294_v42, %v1103_v7  ;;  %v2509_v55 = vld [vmem:[#allocation19_spill] sm:$0xff] }
 0x2bf   : > { %v1251_v28 = vadd.f32 %v2294_v42, %v1104_v57  ;;  %v1047_v11 = vpop.permute.xlu1 %1046  ;;  %v2510_v57 = vld [vmem:[#allocation18_spill] sm:$0xff] }
 0x2c0   : > { %1268 = vst [vmem:[%s2303_s19 + $0x50] sm:$0xff] %v1226_v63  ;;  %1269 = vst.msk [vmem:[%s2303_s19 + $0x58] sm:$0xff] %vm585_vm1, %v1227_v46  ;;  %v1101_v47 = vmul.f32 %v1047_v11, %v2066_v61  ;;  %v1102_v60 = vmul.f32 %v1047_v11, %v2063_v39 }
 0x2c1   : > { %1292 = vst [vmem:[%s2303_s19 + $0x110] sm:$0xff] %v1250_v13  ;;  %1293 = vst.msk [vmem:[%s2303_s19 + $0x118] sm:$0xff] %vm585_vm1, %v1251_v28 }
 0x2c2   : > { %v1248_v14 = vadd.f32 %v2282_v53, %v1101_v47  ;;  %v1249_v54 = vadd.f32 %v2282_v53, %v1102_v60  ;;  %v2497_v53 = vld [vmem:[#allocation10_spill] sm:$0xff] }
 0x2c3   : > { %v997_v40 = vpop.permute.xlu1 %996  ;;  %v1062_v15 = vpop.permute.xlu0 %1061 }
 0x2c4   : > { %1290 = vst [vmem:[%s2303_s19 + $0x100] sm:$0xff] %v1248_v14  ;;  %1291 = vst.msk [vmem:[%s2303_s19 + $0x108] sm:$0xff] %vm585_vm1, %v1249_v54  ;;  %v1081_v42 = vmul.f32 %v997_v40, %v2088_v10  ;;  %v1082_v50 = vmul.f32 %v997_v40, %v2496_v48  ;;  %v2499_v10 = vld [vmem:[#allocation16_spill] sm:$0xff]  ;;  %v1107_v6 = vmul.f32 %v1062_v15, %v2501_v24 }
 0x2c5   : > { %v1108_v35 = vmul.f32 %v1062_v15, %v2502_v29 }
 0x2c6   : > { %v1228_v18 = vadd.f32 %v2272_v62, %v1081_v42  ;;  %v1229_v16 = vadd.f32 %v2272_v62, %v1082_v50 }
 0x2c7   : > { %v1002_v61 = vpop.permute.xlu1 %1001  ;;  %v1012_v39 = vpop.permute.xlu0 %1011 }
 0x2c8   : > { %1270 = vst [vmem:[%s2303_s19 + $0x60] sm:$0xff] %v1228_v18  ;;  %1271 = vst.msk [vmem:[%s2303_s19 + $0x68] sm:$0xff] %vm585_vm1, %v1229_v16  ;;  %v1083_v17 = vmul.f32 %v1002_v61, %v2497_v53  ;;  %v1084_v59 = vmul.f32 %v1002_v61, %v2498_v8  ;;  %v1087_v34 = vmul.f32 %v1012_v39, %v2499_v10 }
 0x2c9   : > { %v1088_v1 = vmul.f32 %v1012_v39, %v2500_v58 }
 0x2ca   : > { %v1230_v0 = vadd.f32 %v2284_v51, %v1083_v17  ;;  %v1231_v62 = vadd.f32 %v2284_v51, %v1084_v59  ;;  %v1234_v31 = vadd.f32 %v2288_v43, %v1087_v34  ;;  %v2503_v51 = vld [vmem:[#allocation9_spill] sm:$0xff] }
 0x2cb   : > { %v1235_v45 = vadd.f32 %v2288_v43, %v1088_v1  ;;  %v1057_v36 = vpop.permute.xlu1 %1056 }
 0x2cc   : > { %1272 = vst [vmem:[%s2303_s19 + $0x70] sm:$0xff] %v1230_v0  ;;  %1273 = vst.msk [vmem:[%s2303_s19 + $0x78] sm:$0xff] %vm585_vm1, %v1231_v62  ;;  %v1105_v27 = vmul.f32 %v1057_v36, %v2503_v51  ;;  %v1106_v19 = vmul.f32 %v1057_v36, %v2504_v33  ;;  %v1209_v43 = vpop.permute.xlu0 %1208 }
 0x2cd   : > { %1276 = vst [vmem:[%s2303_s19 + $0x90] sm:$0xff] %v1234_v31  ;;  %1277 = vst.msk [vmem:[%s2303_s19 + $0x98] sm:$0xff] %vm585_vm1, %v1235_v45  ;;  %v1254_v32 = vadd.f32 %v1209_v43, %v1107_v6  ;;  %v1255_v4 = vadd.f32 %v1209_v43, %v1108_v35 }
 0x2ce   : > { %v1252_v12 = vadd.f32 %v2286_v26, %v1105_v27  ;;  %v1253_v20 = vadd.f32 %v2286_v26, %v1106_v19 }
 0x2cf   : > { %1296 = vst [vmem:[%s2303_s19 + $0x130] sm:$0xff] %v1254_v32  ;;  %1297 = vst.msk [vmem:[%s2303_s19 + $0x138] sm:$0xff] %vm585_vm1, %v1255_v4  ;;  %v1007_v56 = vpop.permute.xlu1 %1006 }
 0x2d0   : > { %1294 = vst [vmem:[%s2303_s19 + $0x120] sm:$0xff] %v1252_v12  ;;  %1295 = vst.msk [vmem:[%s2303_s19 + $0x128] sm:$0xff] %vm585_vm1, %v1253_v20  ;;  %v1085_v23 = vmul.f32 %v1007_v56, %v2505_v2  ;;  %v1086_v22 = vmul.f32 %v1007_v56, %v2506_v25 }
 0x2d2   : > { %v1232_v30 = vadd.f32 %v2274_v5, %v1085_v23  ;;  %v1233_v38 = vadd.f32 %v2274_v5, %v1086_v22 }
 0x2d4   : > { %1274 = vst [vmem:[%s2303_s19 + $0x80] sm:$0xff] %v1232_v30  ;;  %1275 = vst.msk [vmem:[%s2303_s19 + $0x88] sm:$0xff] %vm585_vm1, %v1233_v38 }
 0x30f   : > { %v1067_v26 = vpop.permute.xlu1 %1066 }
 0x310   : > { %v1109_v7 = vmul.f32 %v1067_v26, %v2509_v55  ;;  %v1110_v63 = vmul.f32 %v1067_v26, %v2510_v57 }
 0x313   : > { %v1017_v44 = vpop.permute.xlu1 %1016 }
 0x314   : > { %v1089_v9 = vmul.f32 %v1017_v44, %v2507_v49  ;;  %v1090_v41 = vmul.f32 %v1017_v44, %v2508_v52 }
 0x316   : > { %v1236_v21 = vadd.f32 %v2276_v37, %v1089_v9  ;;  %v1237_v3 = vadd.f32 %v2276_v37, %v1090_v41 }
 0x318   : > { %1278 = vst [vmem:[%s2303_s19 + $0xa0] sm:$0xff] %v1236_v21  ;;  %1279 = vst.msk [vmem:[%s2303_s19 + $0xa8] sm:$0xff] %vm585_vm1, %v1237_v3  ;;  %v1214_v5 = vpop.permute.xlu1 %1213 }
 0x319   : > { %v1256_v46 = vadd.f32 %v1214_v5, %v1109_v7  ;;  %v1257_v13 = vadd.f32 %v1214_v5, %v1110_v63 }
 0x31b   : > { %1298 = vst [vmem:[%s2303_s19 + $0x140] sm:$0xff] %v1256_v46  ;;  %1299 = vst.msk [vmem:[%s2303_s19 + $0x148] sm:$0xff] %vm585_vm1, %v1257_v13 }
 0x31c PF: > { %s14_s15 = sadd.s32 1, %s1496_s15  }
 0x31d   : > { %p11_p4 = scmp.ge.s32.totalorder %s14_s15, 6  }
 0x31f   :  { %13 = sbr.rel (!%p11_p4) target bundleno = 1 (0x1), region = 69 }

</bundles_post_ra>
